<compile_context>
chip_gen: v7x
topology: tpu7x:2x2x1
jax: 0.10.0
libtpu: 0.0.40
codegen_flags: <defaults>
</compile_context>

<pallas_src>
import functools
import math

import jax
import jax.numpy as jnp
from jax.experimental import pallas as pl
from jax.experimental.pallas import tpu as pltpu


def _round_up(x, m):
    return ((x + m - 1) // m) * m


def _cdiv(a, b):
    return (a + b - 1) // b


def _shifted_softplus(x):
    # SchNet shifted softplus: ln(0.5*e^x + 0.5) = softplus(x) - ln(2), in f32.
    return jax.nn.softplus(x) - math.log(2.0)


def _mol_fp_pool_kernel(n_layers, mol_tile, ts_ref, cnt_ref, seg_ref, feats_ref,
                        *refs):
    """refs = (W0, b0, ..., W_{L-1}, b_{L-1}, out_ref, fp_ref, acc_ref)."""
    param_refs = refs[: 2 * n_layers]
    out_ref, fp_ref, acc_ref = refs[2 * n_layers:]

    m = pl.program_id(0)
    k = pl.program_id(1)

    @pl.when(k == 0)
    def _():
        acc_ref[...] = jnp.zeros_like(acc_ref)

    # Only accumulate atom tiles that belong to this mol tile's contiguous
    # atom range (scalar-prefetched per-mol-tile tile counts).
    @pl.when(k < cnt_ref[m])
    def _():
        # mask[i, a] = 1 iff atom a belongs to molecule (mol_base + i).
        # Small-operand mask build: (mol_tile, 1) iota vs (seg - mol_base).
        mol_base = m * mol_tile
        local = seg_ref[...] - mol_base                                 # (1, atom_tile)
        rows = jax.lax.broadcasted_iota(jnp.int32, (mol_tile, 1), 0)    # (mol_tile, 1)
        mask = (rows == local).astype(feats_ref.dtype)                  # bf16 0/1
        # Partial sum-pool on the MXU, accumulated in f32 VMEM scratch.
        acc_ref[...] += jnp.dot(mask, feats_ref[...],
                                preferred_element_type=jnp.float32)

    # Epilogue: fingerprint writeback + mol_fp_nn MLP, on the last atom-axis
    # grid step (output blocks only depend on m, so they stay resident).
    @pl.when(k == pl.num_programs(1) - 1)
    def _():
        pooled = acc_ref[...]                      # f32 (mol_tile, feat_dim_p)
        fp_ref[...] = pooled
        h = pooled
        for layer in range(n_layers):
            w = param_refs[2 * layer][...]         # bf16
            b = param_refs[2 * layer + 1][...]     # f32 (1, d_out)
            h = jnp.dot(h.astype(w.dtype), w,
                        preferred_element_type=jnp.float32) + b
            if layer != n_layers - 1:
                h = _shifted_softplus(h)
        out_ref[...] = h


def init_mol_fp_params(key, feat_dim, num_out_layers, out_dim):
    """Deterministic parameter init matching the module's layer shapes."""
    feat_num = [int(feat_dim / num_out_layers ** m) for m in range(num_out_layers)]
    dims = []
    for i in range(num_out_layers - 1):
        dims.append((feat_num[i], feat_num[i + 1]))
    dims.append((feat_num[-1], out_dim))

    params = []
    for (d_in, d_out) in dims:
        key, kw, kb = jax.random.split(key, 3)
        scale = 1.0 / math.sqrt(d_in)
        w = jax.random.uniform(kw, (d_in, d_out), jnp.float32, -scale, scale)
        b = jax.random.uniform(kb, (1, d_out), jnp.float32, -scale, scale)
        params.append((w, b))
    return params


def mol_fp_pool_forward(atomwise_features, num_atoms, params,
                        out_keys=("energy",), grad_keys=(),
                        compute_dtype=jnp.bfloat16,
                        atom_tile=1024, mol_tile=None):
    """JAX/Pallas equivalent of MolFpPool.forward.

    atomwise_features : [n_atoms_total, feat_dim] float32
    num_atoms         : python list of ints (atoms per molecule, contiguous)
    params            : list of (W, b) for mol_fp_nn (f32)
    """
    n_atoms_total, feat_dim = atomwise_features.shape
    num_atoms = [int(n) for n in num_atoms]
    if sum(num_atoms) != n_atoms_total:
        raise ValueError(
            f"sum(num_atoms)={sum(num_atoms)} != n_atoms_total={n_atoms_total}")
    n_mols = len(num_atoms)
    n_layers = len(params)
    out_dim = params[-1][0].shape[1]

    # --- tile / padding choices (all (8,128)-aligned, lane-dense outputs) ----
    atom_tile = max(128, min(int(atom_tile), _round_up(n_atoms_total, 128)))
    atom_tile = _round_up(atom_tile, 128)
    n_atoms_p = _round_up(n_atoms_total, atom_tile)
    n_atom_tiles = n_atoms_p // atom_tile

    if mol_tile is None:
        cap = 256 if n_mols >= 256 else 128       # 256-row MXU on v6e/v7x
        mol_tile = min(_round_up(n_mols, 8), cap)
        # v7x has 2 TensorCores: keep >= 2 tiles on the "parallel" mol axis.
        if n_mols > 8 and _round_up(n_mols, mol_tile) // mol_tile < 2:
            mol_tile = max(8, _round_up(_round_up(n_mols, 8) // 2, 8))
    mol_tile = max(8, _round_up(int(mol_tile), 8))
    n_mols_p = _round_up(n_mols, mol_tile)
    n_mol_tiles = n_mols_p // mol_tile

    feat_dim_p = _round_up(feat_dim, 128)
    out_dim_p = _round_up(out_dim, 128)

    # --- per-atom molecule ids; padded atoms get -1 so they never match ------
    seg_list = []
    for i, n in enumerate(num_atoms):
        seg_list.extend([i] * n)
    seg_list.extend([-1] * (n_atoms_p - n_atoms_total))
    seg_ids = jnp.asarray(seg_list, dtype=jnp.int32).reshape(1, n_atoms_p)

    # --- per-mol-tile contiguous atom-tile spans (scalar prefetch) -----------
    cum = [0]
    for n in num_atoms:
        cum.append(cum[-1] + n)
    tile_start, tile_count = [], []
    for t in range(n_mol_tiles):
        m0 = t * mol_tile
        m1 = min(m0 + mol_tile, n_mols)
        a0, a1 = cum[m0], cum[m1]
        t0 = min(a0 // atom_tile, n_atom_tiles - 1)
        t1 = min(_cdiv(a1, atom_tile), n_atom_tiles)
        tile_start.append(t0)
        tile_count.append(max(t1 - t0, 1))
    max_cnt = max(tile_count)
    tile_start = jnp.asarray(tile_start, dtype=jnp.int32)
    tile_count = jnp.asarray(tile_count, dtype=jnp.int32)

    # --- bf16 feature stream (halves HBM traffic / VMEM tiles), zero-padded --
    feats = atomwise_features.astype(compute_dtype)
    feats = jnp.pad(feats, ((0, n_atoms_p - n_atoms_total),
                            (0, feat_dim_p - feat_dim)))

    # Weights in compute dtype (MXU), biases in f32; pad first-layer rows to
    # feat_dim_p and last-layer columns to out_dim_p (lane-dense output).
    flat_params = []
    for i, (w, b) in enumerate(params):
        w = w.astype(jnp.float32)
        b = b.astype(jnp.float32).reshape(1, -1)
        if i == 0:
            w = jnp.pad(w, ((0, feat_dim_p - feat_dim), (0, 0)))
        if i == n_layers - 1:
            w = jnp.pad(w, ((0, 0), (0, out_dim_p - out_dim)))
            b = jnp.pad(b, ((0, 0), (0, out_dim_p - out_dim)))
        flat_params.extend([w.astype(compute_dtype), b])

    # --- VMEM budget estimate (double-buffered inputs/outputs + scratch) -----
    est = (2 * atom_tile * feat_dim_p * 2           # feats (bf16, 2 buffers)
           + 2 * atom_tile * 4                      # seg ids
           + 2 * sum(int(p.size) * p.dtype.itemsize for p in flat_params)
           + 2 * mol_tile * (out_dim_p + feat_dim_p) * 4
           + mol_tile * feat_dim_p * 4)             # acc scratch
    vmem_limit = int(min(max(2 * est + (4 << 20), 16 << 20), 48 << 20))

    # --- index maps (scalar-prefetch refs arrive as trailing positional args) -
    def _atom_block(m, k, ts, cnt):
        # Clamp out-of-range steps to this mol tile's last valid atom tile so
        # the block index does not change (no extra DMA); the compute itself
        # is gated by pl.when(k < cnt[m]) inside the kernel.
        return ts[m] + jnp.minimum(k, cnt[m] - 1)

    def _seg_map(m, k, ts, cnt):
        return (0, _atom_block(m, k, ts, cnt))

    def _feats_map(m, k, ts, cnt):
        return (_atom_block(m, k, ts, cnt), 0)

    def _out_map(m, k, ts, cnt):
        return (m, 0)

    def _param_map(m, k, ts, cnt):
        return (0, 0)

    param_specs = [pl.BlockSpec(p.shape, _param_map) for p in flat_params]

    kernel = functools.partial(_mol_fp_pool_kernel, n_layers, mol_tile)

    out_pad, fp_pad = pl.pallas_call(
        kernel,
        out_shape=(
            jax.ShapeDtypeStruct((n_mols_p, out_dim_p), jnp.float32),
            jax.ShapeDtypeStruct((n_mols_p, feat_dim_p), jnp.float32),
        ),
        grid_spec=pltpu.PrefetchScalarGridSpec(
            num_scalar_prefetch=2,
            grid=(n_mol_tiles, max_cnt),
            in_specs=[
                pl.BlockSpec((1, atom_tile), _seg_map),              # seg ids
                pl.BlockSpec((atom_tile, feat_dim_p), _feats_map),   # features
            ] + param_specs,
            out_specs=(
                pl.BlockSpec((mol_tile, out_dim_p), _out_map),
                pl.BlockSpec((mol_tile, feat_dim_p), _out_map),
            ),
            scratch_shapes=[pltpu.VMEM((mol_tile, feat_dim_p), jnp.float32)],
        ),
        compiler_params=pltpu.CompilerParams(
            dimension_semantics=("parallel", "arbitrary"),
            vmem_limit_bytes=vmem_limit),
    )(tile_start, tile_count, seg_ids, feats, *flat_params)

    out = out_pad[:n_mols, :out_dim]
    mol_fp = fp_pad[:n_mols, :feat_dim]

    results = {}
    for key in out_keys:
        results[key] = out.reshape(-1)        # torch.stack(all_outputs).reshape(-1)
        results[f"{key}_features"] = mol_fp   # torch.stack(learned_feats)
    # TODO(synk): grad_keys handled upstream via autodiff (xyz not used here).
    return results


def _reference_forward(atomwise_features, num_atoms, params, compute_dtype):
    """Pure-jnp reference mirroring the PyTorch loop, with the same bf16 MXU
    inputs / f32 accumulation as the kernel."""
    feats32 = atomwise_features.astype(compute_dtype).astype(jnp.float32)
    outs, fps = [], []
    start = 0
    for n in num_atoms:
        f = feats32[start:start + n]
        start += n
        mol_fp = f.sum(0)
        h = mol_fp[None, :]
        for i, (w, b) in enumerate(params):
            h = jnp.dot(h.astype(compute_dtype), w.astype(compute_dtype),
                        preferred_element_type=jnp.float32) + b
            if i != len(params) - 1:
                h = _shifted_softplus(h)
        outs.append(h[0])
        fps.append(mol_fp)
    return jnp.stack(outs).reshape(-1), jnp.stack(fps)


if __name__ == "__main__":
    # Small deterministic example consistent with the module's forward:
    #   feat_dim=128, num_out_layers=2 -> hidden dims [128, 64], out_dim=1
    #   10 molecules, 200 atoms total. atom_tile=128 gives 2 atom tiles with
    #   different per-mol-tile spans, so the grid is (2, 2) and the parallel
    #   mol axis, the scalar-prefetched data-dependent indexing and the
    #   pl.when(k < cnt[m]) gating are all exercised.
    feat_dim = 128
    num_out_layers = 2
    out_dim = 1
    num_atoms = [11, 23, 7, 40, 16, 9, 31, 22, 18, 23]   # sum = 200
    n_atoms_total = sum(num_atoms)

    key = jax.random.PRNGKey(0)
    k_feats, k_params = jax.random.split(key)

    atomwise_features = jax.random.normal(
        k_feats, (n_atoms_total, feat_dim), dtype=jnp.float32)
    params = init_mol_fp_params(k_params, feat_dim, num_out_layers, out_dim)

    results = mol_fp_pool_forward(atomwise_features, num_atoms, params,
                                  out_keys=("energy",), atom_tile=128)
    jax.block_until_ready(results)

    ref_out, ref_fp = _reference_forward(atomwise_features, num_atoms, params,
                                         jnp.bfloat16)
    assert results["energy"].shape == (len(num_atoms) * out_dim,)
    assert results["energy_features"].shape == (len(num_atoms), feat_dim)
    assert jnp.allclose(results["energy_features"], ref_fp, atol=1e-3, rtol=1e-3)
    assert jnp.allclose(results["energy"], ref_out, atol=1e-2, rtol=1e-2)

    print("KERNEL_OK")
</pallas_src>

<mosaic_0001>
module attributes {stable_mosaic.version = 11 : i64} {
  func.func @_mol_fp_pool_kernel(%arg0: i32, %arg1: i32, %arg2: memref<2xi32, #tpu.memory_space<smem>>, %arg3: memref<2xi32, #tpu.memory_space<smem>>, %arg4: memref<1x128xi32, #tpu.memory_space<vmem>>, %arg5: memref<128x128xbf16, #tpu.memory_space<vmem>>, %arg6: memref<128x64xbf16, #tpu.memory_space<vmem>>, %arg7: memref<1x64xf32, #tpu.memory_space<vmem>>, %arg8: memref<64x128xbf16, #tpu.memory_space<vmem>>, %arg9: memref<1x128xf32, #tpu.memory_space<vmem>>, %arg10: memref<8x128xf32, #tpu.memory_space<vmem>>, %arg11: memref<8x128xf32, #tpu.memory_space<vmem>>, %arg12: memref<8x128xf32, #tpu.memory_space<vmem>>) attributes {dimension_semantics = [#tpu.dimension_semantics<parallel>, #tpu.dimension_semantics<arbitrary>], iteration_bounds = array<i64: 2, 2>, scalar_prefetch = 2 : i64, scratch_operands = 1 : i64, tpu.core_type = #tpu.core_type<tc>, window_params = [{transform_indices = @transform_0, window_bounds = array<i64: 1, 128>}, {transform_indices = @transform_1, window_bounds = array<i64: 128, 128>}, {pipeline_mode = #tpu.pipeline_mode<synchronous>, transform_indices = @transform_2, window_bounds = array<i64: 128, 64>}, {pipeline_mode = #tpu.pipeline_mode<synchronous>, transform_indices = @transform_3, window_bounds = array<i64: 1, 64>}, {pipeline_mode = #tpu.pipeline_mode<synchronous>, transform_indices = @transform_4, window_bounds = array<i64: 64, 128>}, {pipeline_mode = #tpu.pipeline_mode<synchronous>, transform_indices = @transform_5, window_bounds = array<i64: 1, 128>}, {transform_indices = @transform_6, window_bounds = array<i64: 8, 128>}, {transform_indices = @transform_7, window_bounds = array<i64: 8, 128>}]} {
    %c0_i32 = arith.constant 0 : i32
    %0 = arith.cmpi eq, %arg1, %c0_i32 : i32
    %1 = arith.extui %0 : i1 to i32
    %c0_i32_0 = arith.constant 0 : i32
    %2 = arith.cmpi ne, %1, %c0_i32_0 : i32
    scf.if %2 {
      %cst = arith.constant 0.000000e+00 : f32
      %11 = vector.broadcast %cst : f32 to vector<8x128xf32>
      %c0 = arith.constant 0 : index
      %c0_3 = arith.constant 0 : index
      %12 = vector.load %arg12[%c0, %c0_3] : memref<8x128xf32, #tpu.memory_space<vmem>>, vector<8x128xf32>
      tpu.vector_store %arg12[%c0, %c0_3], %11 {strides = array<i32>} : memref<8x128xf32, #tpu.memory_space<vmem>>, vector<8x128xf32>,
    } else {
    }
    %3 = arith.index_cast %arg0 : i32 to index
    %4 = memref.load %arg3[%3] : memref<2xi32, #tpu.memory_space<smem>>
    %5 = arith.cmpi slt, %arg1, %4 : i32
    %6 = arith.extui %5 : i1 to i32
    %c0_i32_1 = arith.constant 0 : i32
    %7 = arith.cmpi ne, %6, %c0_i32_1 : i32
    scf.if %7 {
      %c8_i32 = arith.constant 8 : i32
      %11 = arith.muli %arg0, %c8_i32 : i32
      %c0 = arith.constant 0 : index
      %c0_3 = arith.constant 0 : index
      %12 = vector.load %arg4[%c0, %c0_3] : memref<1x128xi32, #tpu.memory_space<vmem>>, vector<1x128xi32>
      %13 = vector.broadcast %11 : i32 to vector<1x128xi32>
      %14 = arith.subi %12, %13 : vector<1x128xi32>
      %15 = tpu.iota {dimensions = array<i32: 0>} : vector<8x1xi32>
      %16 = vector.broadcast %15 : vector<8x1xi32> to vector<8x128xi32>
      %17 = vector.broadcast %14 : vector<1x128xi32> to vector<8x128xi32>
      %18 = arith.cmpi eq, %16, %17 : vector<8x128xi32>
      %19 = arith.extui %18 : vector<8x128xi1> to vector<8x128xi32>
      %20 = arith.sitofp %19 : vector<8x128xi32> to vector<8x128xf32>
      %21 = arith.truncf %20 : vector<8x128xf32> to vector<8x128xbf16>
      %c0_4 = arith.constant 0 : index
      %c0_5 = arith.constant 0 : index
      %22 = vector.load %arg12[%c0_4, %c0_5] : memref<8x128xf32, #tpu.memory_space<vmem>>, vector<8x128xf32>
      %c0_6 = arith.constant 0 : index
      %c0_7 = arith.constant 0 : index
      %23 = vector.load %arg5[%c0_6, %c0_7] : memref<128x128xbf16, #tpu.memory_space<vmem>>, vector<128x128xbf16>
      %cst = arith.constant dense<0.000000e+00> : vector<8x128xf32>
      %24 = tpu.matmul %21, %23, %cst {dimension_numbers = #tpu.dot_dimension_numbers<[1], [0], [0], [1], [0, 0, 1, 1], [], []>} : vector<8x128xbf16>, vector<128x128xbf16>, vector<8x128xf32> -> vector<8x128xf32>
      %25 = arith.addf %22, %24 : vector<8x128xf32>
      %c0_8 = arith.constant 0 : index
      %c0_9 = arith.constant 0 : index
      %26 = vector.load %arg12[%c0_8, %c0_9] : memref<8x128xf32, #tpu.memory_space<vmem>>, vector<8x128xf32>
      tpu.vector_store %arg12[%c0_8, %c0_9], %25 {strides = array<i32>} : memref<8x128xf32, #tpu.memory_space<vmem>>, vector<8x128xf32>,
    } else {
    }
    %c1_i32 = arith.constant 1 : i32
    %8 = arith.cmpi eq, %arg1, %c1_i32 : i32
    %9 = arith.extui %8 : i1 to i32
    %c0_i32_2 = arith.constant 0 : i32
    %10 = arith.cmpi ne, %9, %c0_i32_2 : i32
    scf.if %10 {
      %c0 = arith.constant 0 : index
      %c0_3 = arith.constant 0 : index
      %11 = vector.load %arg12[%c0, %c0_3] : memref<8x128xf32, #tpu.memory_space<vmem>>, vector<8x128xf32>
      %c0_4 = arith.constant 0 : index
      %c0_5 = arith.constant 0 : index
      %12 = vector.load %arg11[%c0_4, %c0_5] : memref<8x128xf32, #tpu.memory_space<vmem>>, vector<8x128xf32>
      tpu.vector_store %arg11[%c0_4, %c0_5], %11 {strides = array<i32>} : memref<8x128xf32, #tpu.memory_space<vmem>>, vector<8x128xf32>,
      %c0_6 = arith.constant 0 : index
      %c0_7 = arith.constant 0 : index
      %13 = vector.load %arg6[%c0_6, %c0_7] : memref<128x64xbf16, #tpu.memory_space<vmem>>, vector<128x64xbf16>
      %c0_8 = arith.constant 0 : index
      %c0_9 = arith.constant 0 : index
      %14 = vector.load %arg7[%c0_8, %c0_9] : memref<1x64xf32, #tpu.memory_space<vmem>>, vector<1x64xf32>
      %15 = arith.truncf %11 : vector<8x128xf32> to vector<8x128xbf16>
      %cst = arith.constant dense<0.000000e+00> : vector<8x64xf32>
      %16 = tpu.matmul %15, %13, %cst {dimension_numbers = #tpu.dot_dimension_numbers<[1], [0], [0], [1], [0, 0, 1, 1], [], []>} : vector<8x128xbf16>, vector<128x64xbf16>, vector<8x64xf32> -> vector<8x64xf32>
      %17 = vector.broadcast %14 : vector<1x64xf32> to vector<8x64xf32>
      %18 = arith.addf %16, %17 : vector<8x64xf32>
      %cst_10 = arith.constant 0.000000e+00 : f32
      %19 = vector.broadcast %cst_10 : f32 to vector<8x64xf32>
      %20 = arith.maximumf %18, %19 : vector<8x64xf32>
      %21 = vector.broadcast %cst_10 : f32 to vector<8x64xf32>
      %22 = arith.subf %18, %21 : vector<8x64xf32>
      %23 = arith.cmpf one, %22, %22 : vector<8x64xf32>
      %24 = vector.broadcast %cst_10 : f32 to vector<8x64xf32>
      %25 = arith.addf %18, %24 : vector<8x64xf32>
      %26 = math.absf %22 : vector<8x64xf32>
      %cst_11 = arith.constant 0.000000e+00 : f32
      %27 = vector.broadcast %cst_11 : f32 to vector<8x64xf32>
      %28 = arith.subf %27, %26 : vector<8x64xf32>
      %29 = math.exp %28 : vector<8x64xf32>
      %30 = math.log1p %29 : vector<8x64xf32>
      %31 = arith.addf %20, %30 : vector<8x64xf32>
      %32 = arith.select %23, %25, %31 : vector<8x64xi1>, vector<8x64xf32>
      %cst_12 = arith.constant 0.693147182 : f32
      %33 = vector.broadcast %cst_12 : f32 to vector<8x64xf32>
      %34 = arith.subf %32, %33 : vector<8x64xf32>
      %c0_13 = arith.constant 0 : index
      %c0_14 = arith.constant 0 : index
      %35 = vector.load %arg8[%c0_13, %c0_14] : memref<64x128xbf16, #tpu.memory_space<vmem>>, vector<64x128xbf16>
      %c0_15 = arith.constant 0 : index
      %c0_16 = arith.constant 0 : index
      %36 = vector.load %arg9[%c0_15, %c0_16] : memref<1x128xf32, #tpu.memory_space<vmem>>, vector<1x128xf32>
      %37 = arith.truncf %34 : vector<8x64xf32> to vector<8x64xbf16>
      %cst_17 = arith.constant dense<0.000000e+00> : vector<8x128xf32>
      %38 = tpu.matmul %37, %35, %cst_17 {dimension_numbers = #tpu.dot_dimension_numbers<[1], [0], [0], [1], [0, 0, 1, 1], [], []>} : vector<8x64xbf16>, vector<64x128xbf16>, vector<8x128xf32> -> vector<8x128xf32>
      %39 = vector.broadcast %36 : vector<1x128xf32> to vector<8x128xf32>
      %40 = arith.addf %38, %39 : vector<8x128xf32>
      %c0_18 = arith.constant 0 : index
      %c0_19 = arith.constant 0 : index
      %41 = vector.load %arg10[%c0_18, %c0_19] : memref<8x128xf32, #tpu.memory_space<vmem>>, vector<8x128xf32>
      tpu.vector_store %arg10[%c0_18, %c0_19], %40 {strides = array<i32>} : memref<8x128xf32, #tpu.memory_space<vmem>>, vector<8x128xf32>,
    } else {
    }
    return
  }
  func.func @transform_0(%arg0: i32, %arg1: i32, %arg2: memref<2xi32, #tpu.memory_space<smem>>, %arg3: memref<2xi32, #tpu.memory_space<smem>>) -> (i32, i32) {
    %0 = arith.index_cast %arg0 : i32 to index
    %1 = memref.load %arg2[%0] : memref<2xi32, #tpu.memory_space<smem>>
    %2 = arith.index_cast %arg0 : i32 to index
    %3 = memref.load %arg3[%2] : memref<2xi32, #tpu.memory_space<smem>>
    %c1_i32 = arith.constant 1 : i32
    %4 = arith.subi %3, %c1_i32 : i32
    %5 = arith.minsi %arg1, %4 : i32
    %6 = arith.addi %1, %5 : i32
    %c0_i32 = arith.constant 0 : i32
    %c0_i32_0 = arith.constant 0 : i32
    return %c0_i32, %6 : i32, i32
  }
  func.func @transform_1(%arg0: i32, %arg1: i32, %arg2: memref<2xi32, #tpu.memory_space<smem>>, %arg3: memref<2xi32, #tpu.memory_space<smem>>) -> (i32, i32) {
    %0 = arith.index_cast %arg0 : i32 to index
    %1 = memref.load %arg2[%0] : memref<2xi32, #tpu.memory_space<smem>>
    %2 = arith.index_cast %arg0 : i32 to index
    %3 = memref.load %arg3[%2] : memref<2xi32, #tpu.memory_space<smem>>
    %c1_i32 = arith.constant 1 : i32
    %4 = arith.subi %3, %c1_i32 : i32
    %5 = arith.minsi %arg1, %4 : i32
    %6 = arith.addi %1, %5 : i32
    %c0_i32 = arith.constant 0 : i32
    %c0_i32_0 = arith.constant 0 : i32
    return %6, %c0_i32 : i32, i32
  }
  func.func @transform_2(%arg0: i32, %arg1: i32, %arg2: memref<2xi32, #tpu.memory_space<smem>>, %arg3: memref<2xi32, #tpu.memory_space<smem>>) -> (i32, i32) {
    %c0_i32 = arith.constant 0 : i32
    %c0_i32_0 = arith.constant 0 : i32
    %c0_i32_1 = arith.constant 0 : i32
    return %c0_i32, %c0_i32_0 : i32, i32
  }
  func.func @transform_3(%arg0: i32, %arg1: i32, %arg2: memref<2xi32, #tpu.memory_space<smem>>, %arg3: memref<2xi32, #tpu.memory_space<smem>>) -> (i32, i32) {
    %c0_i32 = arith.constant 0 : i32
    %c0_i32_0 = arith.constant 0 : i32
    %c0_i32_1 = arith.constant 0 : i32
    return %c0_i32, %c0_i32_0 : i32, i32
  }
  func.func @transform_4(%arg0: i32, %arg1: i32, %arg2: memref<2xi32, #tpu.memory_space<smem>>, %arg3: memref<2xi32, #tpu.memory_space<smem>>) -> (i32, i32) {
    %c0_i32 = arith.constant 0 : i32
    %c0_i32_0 = arith.constant 0 : i32
    %c0_i32_1 = arith.constant 0 : i32
    return %c0_i32, %c0_i32_0 : i32, i32
  }
  func.func @transform_5(%arg0: i32, %arg1: i32, %arg2: memref<2xi32, #tpu.memory_space<smem>>, %arg3: memref<2xi32, #tpu.memory_space<smem>>) -> (i32, i32) {
    %c0_i32 = arith.constant 0 : i32
    %c0_i32_0 = arith.constant 0 : i32
    %c0_i32_1 = arith.constant 0 : i32
    return %c0_i32, %c0_i32_0 : i32, i32
  }
  func.func @transform_6(%arg0: i32, %arg1: i32, %arg2: memref<2xi32, #tpu.memory_space<smem>>, %arg3: memref<2xi32, #tpu.memory_space<smem>>) -> (i32, i32) {
    %c0_i32 = arith.constant 0 : i32
    %c0_i32_0 = arith.constant 0 : i32
    return %arg0, %c0_i32 : i32, i32
  }
  func.func @transform_7(%arg0: i32, %arg1: i32, %arg2: memref<2xi32, #tpu.memory_space<smem>>, %arg3: memref<2xi32, #tpu.memory_space<smem>>) -> (i32, i32) {
    %c0_i32 = arith.constant 0 : i32
    %c0_i32_0 = arith.constant 0 : i32
    return %arg0, %c0_i32 : i32, i32
  }
}

</mosaic_0001>

<bundles_post_ra>
// kernel: tpu_custom_call.1
= control target key start
LH: loop header
LB: loop body
LE: loop exit
PB: predicated region body
PF: predicated region fallthrough
CT: control target
= control target key end

     0   :  { %s1819_s0 = inlined_call_operand.vmem [shape: s32[2], index: 0, kind: input, shape index: {}]   ;;  %s1820_s2 = inlined_call_operand.vmem [shape: s32[1,256], index: 2, kind: input, shape index: {}]   ;;  %s1821_s3 = inlined_call_operand.hbm [shape: bf16[256,128], index: 3, kind: input, shape index: {}]   ;;  %s1822_s4 = inlined_call_operand.vmem [shape: bf16[128,64], index: 4, kind: input, shape index: {}]   ;;  %s1823_s5 = inlined_call_operand.vmem [shape: f32[1,64], index: 5, kind: input, shape index: {}]   ;;  %s1824_s6 = inlined_call_operand.vmem [shape: bf16[64,128], index: 6, kind: input, shape index: {}]   ;;  %s1825_s7 = inlined_call_operand.vmem [shape: f32[1,128], index: 7, kind: input, shape index: {}]   ;;  %s1826_s8 = inlined_call_operand.hbm [shape: f32[16,128], index: 8, kind: output, shape index: {0}]   ;;  %s1827_s9 = inlined_call_operand.hbm [shape: f32[16,128], index: 9, kind: output, shape index: {1}]   ;;  %s1828_s1 = inlined_call_operand.vmem [shape: s32[2], index: 1, kind: input, shape index: {}]  }
   0x1   :  { %1840 = sst [smem:[#allocation29_spill]] %s1826_s8  ;;  %s15_s11 = sshll.u32 %s1819_s0, 4  ;;  %s16_s11 = int_to_ptr.vmem [resolvable:$true] %s15_s11 }
   0x2   :  { %1841 = sst [smem:[#allocation30_spill]] %s1827_s9  ;;  %s19_s14 = sshll.u32 %s1828_s1, 4  ;;  %s20_s14 = int_to_ptr.vmem [resolvable:$true] %s19_s14 }
   0x3   :  { %s1201_s15 = scalar_lea.vmem %s16_s11, 16  ;;  %p1206_p1 = scmp.lt.s32.totalorder %s16_s11, %s16_s11 }
   0x4   :  { %p1202_p0 = scmp.ne.s32.totalorder %s16_s11, %s1201_s15  ;;  %p1207_p2 = scmp.lt.s32.totalorder %s1201_s15, %s1201_s15 }
   0x6   :  { %p1208_p3 = por %p1207_p2, %p1206_p1 }
   0x8   :  { %p1209_p4 = pnand %p1208_p3, %p1202_p0 }
   0xa   :  { %1212 = shalt.err (!%p1209_p4)  }
   0xb   :  { %s1413_s16 = smov [#allocation4]   ;;  %s1213_s17 = scalar_lea.vmem %s20_s14, 16 }
   0xc   :  { %18 = dma.vmem_to_smem %s16_s11, 16, %s1413_s16, [#allocation3] }
   0xd   :  { %p1214_p5 = scmp.ne.s32.totalorder %s20_s14, %s1213_s17  ;;  %p1218_p6 = scmp.lt.s32.totalorder %s20_s14, %s20_s14 }
   0xe   :  { %p1219_p7 = scmp.lt.s32.totalorder %s1213_s17, %s1213_s17 }
  0x10   :  { %p1220_p8 = por %p1219_p7, %p1218_p6 }
  0x12   :  { %p1221_p9 = pnand %p1220_p8, %p1214_p5 }
  0x14   :  { %1224 = shalt.err (!%p1221_p9)  }
  0x15   :  { %s1414_s0 = smov [#allocation5]  }
  0x16   :  { %22 = dma.vmem_to_smem %s20_s14, 16, %s1414_s0, [#allocation3] }
  0x17   :  { %1355 = dma.done.wait [#allocation3], 32 }
  0x18   :  { %1356 = vsyncadd [#allocation3], 4294967264 }
  0x19   :  { %24 = sfence }
  0x1a   :  { %25 = vsyncpa [#allocation7], 0 }
  0x1b   :  { %27 = vsyncpa [#allocation7 + $0x1], 0 }
  0x1c   :  { %28 = vsyncpa [#allocation8], 0 }
  0x1d   :  { %30 = vsyncpa [#allocation8 + $0x1], 0 }
  0x1e   :  { %31 = vsyncpa [#allocation11], 0 }
  0x1f   :  { %33 = vsyncpa [#allocation11 + $0x1], 0  ;;  %s1482_s1 = smov 0   ;;  %s1484_s18 = smov 0  }
  0x20   :  { %s1486_s19 = smov 0   ;;  %s1488_s20 = smov 0  }
  0x21   :  { %s1490_s21 = smov 0   ;;  %s1492_s22 = smov 0  }
  0x22   :  { %s1494_s23 = smov 0   ;;  %s1496_s24 = smov 0  }
  0x23   :  { %s1498_s25 = smov 0   ;;  %s1500_s26 = smov 0  }
  0x24   :  { %s1502_s27 = smov 0  }
  0x25 LB: > { %1842 = sst [smem:[#allocation20_spill]] %s1371_s1  ;;  %s922_s28 = sadd.s32 4294967295, %s1411_s27   ;;  %s1411_s27 = sphi %s1502_s27, %s39_s27   ;;  %s1407_s26 = sphi %s1500_s26, %s1871_s26   ;;  %s1403_s25 = sphi %s1498_s25, %s1877_s25   ;;  %s1399_s24 = sphi %s1496_s24, %s1869_s24   ;;  %s1395_s23 = sphi %s1494_s23, %s1876_s23   ;;  %s1391_s22 = sphi %s1492_s22, %s1868_s22   ;;  %s1387_s21 = sphi %s1490_s21, %s1875_s21   ;;  %s1383_s20 = sphi %s1488_s20, %s1874_s20   ;;  %s1379_s19 = sphi %s1486_s19, %s1866_s19   ;;  %s1375_s18 = sphi %s1484_s18, %s1873_s18   ;;  %s1371_s1 = sphi %s1482_s1, %s1872_s1  }
  0x26   : > { %1843 = sst [smem:[#allocation21_spill]] %s1379_s19  ;;  %s48_s29 = sadd.s32 1, %s1403_s25 }
  0x27   : > { %1844 = sst [smem:[#allocation22_spill]] %s1391_s22  ;;  %p49_p10 = scmp.ge.s32.totalorder %s48_s29, 2 }
  0x28   : > { %1845 = sst [smem:[#allocation23_spill]] %s1407_s26  ;;  %s51_s30 = sadd.s32 1, %s1407_s26 }
  0x29   : > { %s923_s10 = sadd.s32 4294967294, %s1411_s27   ;;  %s94_s11 = sld [smem:[#allocation5 + %s1407_s26]] }
  0x2a   : > { %s1879_s29 = smov (%p49_p10, %s48_s29), 0  ;;  %s1881_s30 = smov (!%p49_p10, %s51_s30), %s1407_s26 }
  0x2b   : > { %1846 = sst [smem:[#allocation24_spill]] %s1879_s29  ;;  %p115_p11 = scmp.ne.s32.totalorder %s1391_s22, %s1387_s21 }
  0x2c   : > { %s1544_s12 = sld [smem:[#allocation4 + %s1407_s26]]  ;;  %p53_p12 = scmp.ge.s32.totalorder %s1881_s30, 2 }
  0x2d   : > { %p121_p13 = scmp.ne.s32.totalorder %s1387_s21, %s1383_s20  ;;  %p116_p0 = scmp.eq.s32.totalorder %s1411_s27, 0 }
  0x2e   : > { %p122_p1 = scmp.eq.s32.totalorder %s922_s28, 0  ;;  %s1883_s30 = smov (%p53_p12, %s1881_s30), 0 }
  0x2f   : > { %1847 = sst [smem:[#allocation25_spill]] %s1883_s30  ;;  %s926_s13 = sadd.s32 4294967295, %s94_s11 }
  0x30   : > { %p1552_p2 = por %p122_p1, %p121_p13  ;;  %p96_p3 = scmp.lt.s32.totalorder %s1403_s25, %s926_s13 }
  0x31   : > { %s99_s15 = sld [smem:[#allocation4 + %s1883_s30]]  ;;  %s215_s17 = ssub.s32 %s1407_s26, %s1883_s30 }
  0x32   : > { %s1848_s14 = scalar_select %p1552_p2, 1, 0 }
  0x33   : > { %s100_s16 = sld [smem:[#allocation5 + %s1883_s30]]  ;;  %p216_p4 = scmp.eq.s32.totalorder %s215_s17, 0 }
  0x34   : > { %s97_s0 = scalar_select %p96_p3, %s1403_s25, %s926_s13 }
  0x35   : > { %s218_s20 = sadd.s32 1, %s1379_s19  ;;  %p228_p5 = scmp.ne.s32.totalorder %s1379_s19, %s1375_s18 }
  0x36   : > { %s98_s9 = sadd.s32 %s97_s0, %s1544_s12  ;;  %p229_p6 = scmp.eq.s32.totalorder %s922_s28, 3 }
  0x37   : > { %s1567_s11 = scalar_select %p216_p4, %s1379_s19, %s218_s20  }
  0x38   : > { %p234_p7 = scmp.ne.s32.totalorder %s1375_s18, %s1371_s1  ;;  %p235_p8 = scmp.eq.s32.totalorder %s923_s10, 3 }
  0x39   : > { %1849 = sst [smem:[#allocation26_spill]] %s1567_s11  ;;  %s927_s8 = sadd.s32 4294967295, %s100_s16 }
  0x3a   : > { %p102_p9 = scmp.lt.s32.totalorder %s1879_s29, %s927_s8  ;;  %p1572_p10 = por %p229_p6, %p228_p5 }
  0x3b   : > { %p1576_p12 = por %p235_p8, %p234_p7  ;;  %s108_s20 = sadd.s32 1, %s1391_s22 }
  0x3c   : > { %s1850_s13 = scalar_select %p1572_p10, 1, 0 }
  0x3d   : > { %s1851_s17 = scalar_select %p1576_p12, 1, 0 }
  0x3e   : > { %s103_s12 = scalar_select %p102_p9, %s1879_s29, %s927_s8 }
  0x3f   : > { %1852 = sst [smem:[#allocation27_spill]] %s1851_s17  ;;  %p117_p13 = por %p116_p0, %p115_p11 }
  0x40   : > { %s104_s0 = sadd.s32 %s103_s12, %s99_s15  ;;  %p1077_p3 = scmp.lt.s32.totalorder %s1411_s27, 4 }
  0x41   : > { %s105_s30 = ssub.s32 %s98_s9, %s104_s0  ;;  %s311_s11 = sand.u32 1, %s1391_s22  }
  0x42   : > { %p106_p1 = scmp.eq.s32.totalorder %s105_s30, 0  ;;  %p1593_p4 = pnand %p1077_p3, %p117_p13 }
  0x43   : > { %s1052_s28 = scalar_select %p117_p13, [#allocation4], [#allocation12] }
  0x44   : > { %s1589_s10 = scalar_select %p106_p1, %s1391_s22, %s108_s20  }
  0x45   : > { %s1053_s16 = scalar_select %p117_p13, %s1407_s26, 0 }
  0x46   : > { %1853 = sst [smem:[#allocation28_spill]] %s1589_s10  ;;  %s1887_s28 = smov (!%p1077_p3, %s1052_s28), [#allocation14] }
  0x47   : > { %s1885_s16 = smov (!%p1077_p3, %s1053_s16), 0  ;;  %s930_s15 = sshll.u32 %s311_s11, 6 }
  0x48   : > { %s1054_s19 = scalar_select %p117_p13, [#allocation5], [#allocation13] }
  0x49   : > { %p934_p11 = scmp.ge.s32.totalorder %s1411_s27, 1  ;;  %p336_p0 = scmp.lt.s32.totalorder %s1411_s27, 5 }
  0x4a   : > { %s1889_s19 = smov (!%p1077_p3, %s1054_s19), [#allocation15]  ;;  %s316_s30 = sld [smem:[%s1887_s28 + %s1885_s16]] }
  0x4b   : > { %s317_s9 = sld [smem:[%s1889_s19 + %s1885_s16]]  ;;  %p1599_p5 = pnand %p934_p11, %p336_p0 }
  0x4c   : > { %s315_s20 = scalar_lea.vmem [#allocation6], %s930_s15  ;;  %s1612_s28 = scalar_lea.sflag [#allocation7], %s311_s11 }
  0x4d   : > { %s328_s29 = sshll.u32 %s315_s20, 4  ;;  %p1227_p8 = pneg %p1593_p4  ;;  %s1605_s29 = int_to_ptr.vmem [resolvable:$true] %s328_s29 }
  0x4e   : > { %s1230_s17 = scalar_lea.hbm %s1821_s3, 2048 }
  0x51   : > { %s931_s0 = sadd.s32 4294967295, %s317_s9 }
  0x52   : > { %p319_p6 = scmp.lt.s32.totalorder %s1403_s25, %s931_s0 }
  0x54   : > { %s320_s26 = scalar_select %p319_p6, %s1403_s25, %s931_s0 }
  0x56   : > { %s321_s10 = sadd.s32 %s320_s26, %s316_s30 }
  0x57   : > { %s976_s22 = sshll.u32 %s321_s10, 10 }
  0x58   : > { %s1610_s1 = scalar_lea.hbm %s1821_s3, %s976_s22 }
  0x59   : > { %s1225_s16 = scalar_lea.hbm %s1610_s1, 1024  ;;  %p1231_p1 = scmp.lt.u32.totalorder %s1610_s1, %s1821_s3 }
  0x5a   : > { %p1226_p7 = scmp.ne.s32.totalorder %s1610_s1, %s1225_s16  ;;  %p1232_p3 = scmp.lt.u32.totalorder %s1230_s17, %s1225_s16 }
  0x5b   : > { %p1234_p0 = scmp.lt.u32.totalorder %s1225_s16, %s1610_s1 }
  0x5c   : > { %p1228_p9 = pnand %p1227_p8, %p1226_p7  ;;  %p1233_p11 = por %p1232_p3, %p1231_p1 }
  0x5e   : > { %p1229_p13 = pneg %p1228_p9  ;;  %p1235_p6 = por %p1234_p0, %p1233_p11 }
  0x60   : > { %p1236_p12 = pnand %p1235_p6, %p1229_p13 }
  0x62   : > { %1239 = shalt.err (!%p1236_p12)
}
  0x63   : > { %s1240_s11 = scalar_lea.vmem %s1605_s29, 1024  ;;  %s1415_s15 = smov [#allocation6]  }
  0x64   : > { %p1241_p7 = scmp.ne.s32.totalorder %s1605_s29, %s1240_s11  ;;  %s1245_s30 = sshll.u32 %s1415_s15, 4  ;;  %s1246_s30 = int_to_ptr.vmem [resolvable:$false] %s1245_s30 }
  0x65   : > { %s1247_s0 = scalar_lea.vmem %s1246_s30, 2048  ;;  %p1248_p2 = scmp.lt.s32.totalorder %s1605_s29, %s1246_s30 }
  0x66   : > { %p1243_p9 = pnand %p1241_p7, %p1227_p8  ;;  %p1249_p1 = scmp.lt.s32.totalorder %s1247_s0, %s1240_s11 }
  0x68   : > { %p1244_p10 = pneg %p1243_p9  ;;  %p1250_p3 = por %p1249_p1, %p1248_p2 }
  0x6a   : > { %p1251_p11 = pnand %p1250_p3, %p1244_p10 }
  0x6c   : > { %1254 = shalt.err (!%p1251_p11)
}
  0x6d   : > { %s1416_s20 = smov 64   ;;  %s1417_s19 = smov 4  }
  0x6e   : > { %1069 = dma.hbm_to_vmem [thread:$0]  (!%p1593_p4), %s1610_s1, 1024, %s1605_s29, %s1612_s28, %s1416_s20, %s1416_s20, %s1417_s19  }
  0x6f   : > { %340 = sbr.rel (%p1599_p5) target bundleno = 945 (0x3b1), region = 44  ;;  %s342_s16 = sand.u32 (!%p1599_p5), 1, %s1387_s21  }
  0x70   : > { %s935_s26 = sshll.u32 (!%p1599_p5), %s342_s16, 6  ;;  %s343_s10 = scalar_lea.sflag (!%p1599_p5), [#allocation7], %s342_s16 }
  0x71   : > { %s1643_s17 = scalar_lea.vmem (!%p1599_p5), [#allocation6], %s935_s26  ;;  %p1856_p2 = scmp.ne.s32.totalorder (!%p1599_p5), %s1848_s14, 0 }
  0x76   : > { %1358 = dma.done.wait (%p1856_p2), %s343_s10, 1024  }
  0x77   : > { %1360 = vsyncadd (%p1856_p2), %s343_s10, 4294966272  ;;  %s1650_s1 = sand.u32 1, %s1375_s18   ;;  %s392_s29 = sld [smem:[#allocation5 + %s1399_s24]] }
  0x78   : > { %s936_s8 = sshll.u32 %s1650_s1, 3  ;;  %s391_s12 = sld [smem:[#allocation4 + %s1399_s24]] }
  0x79   : > { %s1663_s30 = scalar_lea.vmem [#allocation9], %s936_s8  ;;  %s1665_s0 = scalar_lea.vmem [#allocation10], %s936_s8 }
  0x7a   : > { %p939_p4 = scmp.ne.s32.totalorder %s1395_s23, 0 }
  0x7b   : > { %v1418_v0 = vmov (!%p939_p4), 0.0  }
  0x7c   : > { %418 = vst [vmem:[#allocation2] sm:$0xff] (!%p939_p4), %v1418_v0 }
  0x7d   : > { %s938_s28 = sadd.s32 4294967295, %s392_s29 }
  0x7e   : > { %p394_p10 = scmp.lt.s32.totalorder %s1395_s23, %s938_s28 }
  0x80   : > { %s395_s22 = scalar_select %p394_p10, %s1395_s23, %s938_s28 }
  0x81   : > { %417 = sbr.rel (%p939_p4) target bundleno = 136 (0x88), region = 52 }
  0x82   : > { %s396_s9 = sadd.s32 %s395_s22, %s391_s12 }
  0x83   : > { %p397_p12 = scmp.lt.s32.totalorder %s396_s9, 1 }
  0x85   : > { %s1891_s9 = smov (!%p397_p12, %s396_s9), 1 }
  0x86   : > { %s399_s15 = scalar_lea.vmem %s1820_s2, %s1891_s9 }
  0x88 PF: > { %s419_s20 = sld [smem:[#allocation5 + %s1399_s24]] }
  0x8e   : > { %p940_p5 = scmp.ge.s32.totalorder %s1395_s23, %s419_s20 }
  0x8f   : > { %v1177_v1 = vld [vmem:[%s1643_s17] sm:$0xff] (!%p940_p5)   ;;  %v1419_v2 = vmov (!%p940_p5), 0.0   ;;  %v1178_v3 = vld [vmem:[%s1643_s17 + $0x8] sm:$0xff] (!%p940_p5)   ;;  %vm1420_vm0 = vmmov (!%p940_p5), 0   ;;  %v1179_v4 = vld [vmem:[%s1643_s17 + $0x10] sm:$0xff] (!%p940_p5)   ;;  %v428_v6 = vlaneseq (!%p940_p5)  ;;  %s941_s19 = sshll.u32 (!%p940_p5), %s1399_s24, 3 }
  0x90   : > { %423 = sbr.rel (%p940_p5) target bundleno = 391 (0x187), region = 56  ;;  %1000 = vmatprep.subr.bf16.mxu0 (!%p940_p5), %v1419_v2  ;;  %1016 = vmatprep.mubr.msk.bf16.mxu0 (!%p940_p5), %vm1420_vm0, %v1419_v2  ;;  %v1180_v5 = vld [vmem:[%s1643_s17 + $0x18] sm:$0xff] (!%p940_p5)   ;;  %v1181_v7 = vld [vmem:[%s1643_s17 + $0x20] sm:$0xff] (!%p940_p5)   ;;  %v426_v10 = vstv (!%p940_p5), %s941_s19  ;;  %v1182_v11 = vld [vmem:[%s1643_s17 + $0x28] sm:$0xff] (!%p940_p5)   ;;  %v1421_v17 = vmov (!%p940_p5), 1.0|1.0  }
  0x91   : > { %1001 = vmatpush3.bf16.msra.mxu0 (!%p940_p5), %v1177_v1  ;;  %v429_v8 = vshrl.u32 (!%p940_p5), %v428_v6, 7  ;;  %v425_v9 = vld [vmem:[%s399_s15] sm:$0x1] (!%p940_p5)  ;;  %v1183_v14 = vld [vmem:[%s1643_s17 + $0x30] sm:$0xff] (!%p940_p5)  }
  0x92   : > { %1002 = vmatprep.subr.bf16.mxu0 (!%p940_p5), %v1419_v2  ;;  %v427_v12 = vsub.s32 (!%p940_p5), %v425_v9, %v426_v10  ;;  %v1184_v16 = vld [vmem:[%s1643_s17 + $0x38] sm:$0xff] (!%p940_p5)  }
  0x93   : > { %v432_v13 = vsub.s32 (!%p940_p5), 0, %v429_v8  ;;  %v438_v18 = vld [vmem:[#allocation2] sm:$0xff] (!%p940_p5) }
  0x95   : > { %1003 = vmatpush3.bf16.msra.mxu0 (!%p940_p5), %v1178_v3  ;;  %v433_v15 = vrot.slane (!%p940_p5), %v427_v12, %v432_v13 }
  0x96   : > { %1004 = vmatprep.subr.bf16.mxu0 (!%p940_p5), %v1419_v2 }
  0x97   : > { %vm434_vm1 = vcmp.eq.s32.totalorder %v429_v8, %v433_v15 }
  0x98   : > { %vm951_vm2 = vmpackc.low %vm434_vm1, %vm434_vm1 }
  0x99   : > { %1005 = vmatpush3.bf16.msra.mxu0 %v1179_v4 }
  0x9a   : > { %1006 = vmatprep.subr.bf16.mxu0 %v1419_v2 }
  0x9d   : > { %1007 = vmatpush3.bf16.msra.mxu0 %v1180_v5 }
  0x9e   : > { %1008 = vmatprep.subr.bf16.mxu0 %v1419_v2 }
  0xa1   : > { %1009 = vmatpush3.bf16.msra.mxu0 %v1181_v7 }
  0xa2   : > { %1010 = vmatprep.subr.bf16.mxu0 %v1419_v2 }
  0xa5   : > { %1011 = vmatpush3.bf16.msra.mxu0 %v1182_v11 }
  0xa6   : > { %1012 = vmatprep.subr.bf16.mxu0 %v1419_v2 }
  0xa9   : > { %1013 = vmatpush3.bf16.msra.mxu0 %v1183_v14 }
  0xaa   : > { %1014 = vmatprep.subr.bf16.mxu0 %v1419_v2 }
  0xad   : > { %1015 = vmatpush3.bf16.msra.mxu0 %v1184_v16 }
  0xb0   : > { %1017 = vmatmul.mubr.msk.bf16.vlgmr.msra.gmra.mrb[0].mxu0 %vm951_vm2, %v1421_v17 }
 0x183   : > { %v537_v19 = vpop.f32.mrb[0].mxu0 }
 0x184   : > { %v543_v20 = vadd.f32 %v537_v19, %v438_v18  ;;  %v1018_v21 = vpop.f32.mrb[1].mxu0 }
 0x185   : > { %v540_v22 = vpop.f32.mrb[2].mxu0 }
 0x186   : > { %544 = vst [vmem:[#allocation2] sm:$0xff] %v543_v20  ;;  %v1019_v23 = vpop.f32.mrb[3].mxu0 }
 0x187 PF: > { %p953_p8 = scmp.ne.s32.totalorder %s1395_s23, 1 }
 0x188   : > { %v1185_v24 = vld [vmem:[%s1822_s4] sm:$0xff] (!%p953_p8)   ;;  %v1422_v25 = vmov (!%p953_p8), 0.0   ;;  %v1186_v26 = vld [vmem:[%s1822_s4 + $0x8] sm:$0xff] (!%p953_p8)   ;;  %vm1423_vm3 = vmmov (!%p953_p8), 0   ;;  %v1187_v27 = vld [vmem:[%s1822_s4 + $0x10] sm:$0xff] (!%p953_p8)   ;;  %vm722_vm6 = vcmask (!%p953_p8), 523264  }
 0x189   : > { %548 = sbr.rel (%p953_p8) target bundleno = 894 (0x37e), region = 60  ;;  %1020 = vmatprep.subr.bf16.mxu0 (!%p953_p8), %v1422_v25  ;;  %1040 = vmatprep.subr.bf16.mxu1 (!%p953_p8), %v1422_v25  ;;  %v1188_v28 = vld [vmem:[%s1822_s4 + $0x18] sm:$0xff] (!%p953_p8)   ;;  %v1189_v30 = vld [vmem:[%s1822_s4 + $0x20] sm:$0xff] (!%p953_p8)   ;;  %v1190_v31 = vld [vmem:[%s1822_s4 + $0x28] sm:$0xff] (!%p953_p8)  }
 0x18a   : > { %1021 = vmatpush3.bf16.msra.mxu0 (!%p953_p8), %v1185_v24  ;;  %1036 = vmatprep.mubr.msk.bf16.mxu0 (!%p953_p8), %vm1423_vm3, %v1422_v25  ;;  %v1191_v32 = vld [vmem:[%s1822_s4 + $0x30] sm:$0xff] (!%p953_p8)   ;;  %v1192_v33 = vld [vmem:[%s1822_s4 + $0x38] sm:$0xff] (!%p953_p8)   ;;  %v1193_v35 = vld [vmem:[%s1824_s6] sm:$0xff] (!%p953_p8)  }
 0x18b   : > { %1022 = vmatprep.subr.bf16.mxu0 (!%p953_p8), %v1422_v25  ;;  %1048 = vmatprep.mubr.msk.bf16.mxu1 (!%p953_p8), %vm1423_vm3, %v1422_v25  ;;  %v1194_v36 = vld [vmem:[%s1824_s6 + $0x8] sm:$0xff] (!%p953_p8)   ;;  %v1195_v37 = vld [vmem:[%s1824_s6 + $0x10] sm:$0xff] (!%p953_p8)   ;;  %v1196_v38 = vld [vmem:[%s1824_s6 + $0x18] sm:$0xff] (!%p953_p8)  }
 0x18c   : > { %1041 = vmatpush3.bf16.msra.mxu1 (!%p953_p8), %v1193_v35  ;;  %v954_v39 = vld [vmem:[%s1823_s5] ss:$0 sm:$0xff] (!%p953_p8) }
 0x18d   : > { %v549_v29 = vld [vmem:[#allocation2] sm:$0xff] (!%p953_p8)  ;;  %1042 = vmatprep.subr.bf16.mxu1 (!%p953_p8), %v1422_v25 }
 0x18e   : > { %1023 = vmatpush3.bf16.msra.mxu0 (!%p953_p8), %v1186_v26  ;;  %550 = vst [vmem:[%s1665_s0] sm:$0xff] (!%p953_p8), %v549_v29  ;;  %v568_v34 = vpack.c.bf16 (!%p953_p8), %v549_v29, %v549_v29  ;;  %v964_v62 = vld [vmem:[%s1825_s7] ss:$0 sm:$0xff] (!%p953_p8) }
 0x18f   : > { %1024 = vmatprep.subr.bf16.mxu0 (!%p953_p8), %v1422_v25 }
 0x190   : > { %1043 = vmatpush3.bf16.msra.mxu1 %v1194_v36 }
 0x191   : > { %1044 = vmatprep.subr.bf16.mxu1 %v1422_v25 }
 0x192   : > { %1025 = vmatpush3.bf16.msra.mxu0 %v1187_v27 }
 0x193   : > { %1026 = vmatprep.subr.bf16.mxu0 %v1422_v25 }
 0x194   : > { %1045 = vmatpush3.bf16.msra.mxu1 %v1195_v37 }
 0x195   : > { %1046 = vmatprep.subr.bf16.mxu1 %v1422_v25 }
 0x196   : > { %1027 = vmatpush3.bf16.msra.mxu0 %v1188_v28 }
 0x197   : > { %1028 = vmatprep.subr.bf16.mxu0 %v1422_v25 }
 0x198   : > { %1047 = vmatpush3.bf16.msra.mxu1 %v1196_v38 }
 0x19a   : > { %1029 = vmatpush3.bf16.msra.mxu0 %v1189_v30 }
 0x19b   : > { %1030 = vmatprep.subr.bf16.mxu0 %v1422_v25 }
 0x19e   : > { %1031 = vmatpush3.bf16.msra.mxu0 %v1190_v31 }
 0x19f   : > { %1032 = vmatprep.subr.bf16.mxu0 %v1422_v25 }
 0x1a2   : > { %1033 = vmatpush3.bf16.msra.mxu0 %v1191_v32 }
 0x1a3   : > { %1034 = vmatprep.subr.bf16.mxu0 %v1422_v25 }
 0x1a6   : > { %1035 = vmatpush3.bf16.msra.mxu0 %v1192_v33 }
 0x1a9   : > { %1037 = vmatmul.mubr.bf16.vlgmr.msra.gmra.mrb[0].mxu0 %v568_v34 }
 0x27c   : > { %v657_v40 = vpop.f32.mrb[0].mxu0 }
 0x27d   : > { %v658_v41 = vadd.f32 %v954_v39, %v657_v40  ;;  %v1038_v42 = vpop.f32.mrb[1].mxu0 }
 0x27e   : > { %v660_v43 = vpop.f32.mrb[2].mxu0 }
 0x27f   : > { %v666_v44 = vand.u32 2147483647, %v658_v41  ;;  %v1039_v45 = vpop.f32.mrb[3].mxu0  ;;  %v663_v56 = vmax.f32 %v658_v41, 0.0  ;;  %vm664_vm5 = vcmp.ne.f32.partialorder %v658_v41, %v658_v41 }
 0x281   : > { %v667_v46 = vsub.f32 0.0, %v666_v44 }
 0x283   : > { %v668_v47 = vmul.f32 1.442695, %v667_v46 }
 0x285   : > { %1197 = vpow2.f32 %v668_v47 }
 0x28f   : > { %v1198_v48 = vpop.eup %1197 }
 0x290   : > { %v670_v49 = vadd.f32 1.0, %v1198_v48  ;;  %v673_v50 = vmul.f32 -0.5, %v1198_v48  ;;  %v676_v52 = vand.u32 2147483647, %v1198_v48 }
 0x292   : > { %1199 = vlog2.f32 %v670_v49  ;;  %v674_v51 = vadd.f32 1.0, %v673_v50  ;;  %vm677_vm4 = vcmp.lt.f32.partialorder %v676_v52, 0.0004427343 }
 0x294   : > { %v675_v55 = vmul.f32 %v1198_v48, %v674_v51 }
 0x29c   : > { %v1200_v53 = vpop.eup %1199 }
 0x29d   : > { %v672_v54 = vmul.f32 0.6931472, %v1200_v53 }
 0x29f   : > { %v678_v57 = vsel %vm677_vm4, %v675_v55, %v672_v54 }
 0x2a0   : > { %v679_v58 = vadd.f32 %v678_v57, %v663_v56 }
 0x2a2   : > { %v680_v59 = vsel %vm664_vm5, %v658_v41, %v679_v58 }
 0x2a3   : > { %v963_v60 = vadd.f32 -0.6931472, %v680_v59 }
 0x2a5   : > { %v691_v61 = vpack.c.bf16 %v963_v60, %v963_v60 }
 0x2a7   : > { %1049 = vmatmul.mubr.msk.bf16.vlgmr.msra.gmra.mrb[0].mxu1 %vm722_vm6, %v691_v61 }
 0x37a   : > { %v760_v63 = vpop.f32.mrb[0].mxu1 }
 0x37b   : > { %v761_v0 = vadd.f32 %v964_v62, %v760_v63  ;;  %v1050_v1 = vpop.f32.mrb[1].mxu1 }
 0x37c   : > { %v763_v2 = vpop.f32.mrb[2].mxu1 }
 0x37d   : > { %766 = vst [vmem:[%s1663_s30] sm:$0xff] %v761_v0  ;;  %v1051_v3 = vpop.f32.mrb[3].mxu1 }
 0x37e PF: > { %s972_s20 = sshll.u32 %s1399_s24, 7  ;;  %s1857_s26 = sld [smem:[#allocation29_spill]] }
 0x37f   : > { %s786_s17 = sshll.u32 %s1663_s30, 4  ;;  %s768_s8 = scalar_lea.sflag [#allocation8], %s1650_s1  ;;  %s787_s17 = int_to_ptr.vmem [resolvable:$true] %s786_s17 }
 0x380   : > { %s1255_s23 = scalar_lea.vmem %s787_s17, 128  ;;  %p1859_p0 = scmp.ne.s32.totalorder %s1850_s13, 0 }
 0x381   : > { %p1256_p13 = scmp.ne.s32.totalorder %s787_s17, %s1255_s23  ;;  %s1424_s12 = smov [#allocation9]  }
 0x382   : > { %s1259_s28 = sshll.u32 %s1424_s12, 4  ;;  %s1260_s28 = int_to_ptr.vmem [resolvable:$false] %s1259_s28 }
 0x383   : > { %p1257_p6 = pnand %p1256_p13, %p1859_p0  ;;  %s1261_s22 = scalar_lea.vmem %s1260_s28, 256 }
 0x384   : > { %s1858_s10 = smov %s1857_s26  ;;  %s1735_s29 = scalar_lea.hbm %s1857_s26, %s972_s20 }
 0x385   : > { %p1258_p7 = pneg %p1257_p6  ;;  %p1262_p9 = scmp.lt.s32.totalorder %s787_s17, %s1260_s28 }
 0x386   : > { %p1263_p1 = scmp.lt.s32.totalorder %s1261_s22, %s1255_s23 }
 0x388   : > { %p1264_p3 = por %p1263_p1, %p1262_p9 }
 0x38a   : > { %p1265_p11 = pnand %p1264_p3, %p1258_p7 }
 0x38c   : > { %1268 = shalt.err (!%p1265_p11)
}
 0x38d   : > { %s1269_s30 = scalar_lea.hbm %s1735_s29, 128  ;;  %s1273_s11 = scalar_lea.hbm %s1858_s10, 256 }
 0x38e   : > { %p1270_p2 = scmp.ne.s32.totalorder %s1735_s29, %s1269_s30  ;;  %p1274_p4 = scmp.lt.u32.totalorder %s1735_s29, %s1858_s10 }
 0x38f   : > { %p1275_p5 = scmp.lt.u32.totalorder %s1273_s11, %s1269_s30  ;;  %p1277_p13 = scmp.lt.u32.totalorder %s1269_s30, %s1735_s29 }
 0x390   : > { %p1271_p10 = pnand %p1270_p2, %p1859_p0 }
 0x391   : > { %p1276_p8 = por %p1275_p5, %p1274_p4 }
 0x392   : > { %p1272_p12 = pneg %p1271_p10 }
 0x393   : > { %p1278_p6 = por %p1277_p13, %p1276_p8 }
 0x395   : > { %p1279_p7 = pnand %p1278_p6, %p1272_p12 }
 0x397   : > { %1282 = shalt.err (!%p1279_p7)
}
 0x398   : > { %1058 = dma.vmem_to_hbm [thread:$0]  (%p1859_p0), %s787_s17, 128, %s1735_s29, %s768_s8  }
 0x399   : > { %s1860_s23 = sld [smem:[#allocation30_spill]]  ;;  %s799_s22 = sshll.u32 %s1665_s0, 4  ;;  %s800_s22 = int_to_ptr.vmem [resolvable:$true] %s799_s22 }
 0x39a   : > { %s773_s30 = scalar_lea.sflag [#allocation11], %s1650_s1  ;;  %s1283_s9 = scalar_lea.vmem %s800_s22, 128 }
 0x39b   : > { %p1284_p9 = scmp.ne.s32.totalorder %s800_s22, %s1283_s9  ;;  %s1425_s14 = smov [#allocation10]  }
 0x39c   : > { %s1287_s11 = sshll.u32 %s1425_s14, 4  ;;  %s1288_s11 = int_to_ptr.vmem [resolvable:$false] %s1287_s11 }
 0x39d   : > { %p1285_p1 = pnand %p1284_p9, %p1859_p0  ;;  %s1289_s15 = scalar_lea.vmem %s1288_s11, 256 }
 0x39e   : > { %p1290_p11 = scmp.lt.s32.totalorder %s800_s22, %s1288_s11  ;;  %p1291_p2 = scmp.lt.s32.totalorder %s1289_s15, %s1283_s9 }
 0x39f   : > { %s1861_s12 = smov %s1860_s23  ;;  %s1761_s28 = scalar_lea.hbm %s1860_s23, %s972_s20 }
 0x3a0   : > { %p1286_p3 = pneg %p1285_p1  ;;  %p1292_p10 = por %p1291_p2, %p1290_p11 }
 0x3a2   : > { %p1293_p12 = pnand %p1292_p10, %p1286_p3 }
 0x3a4   : > { %1296 = shalt.err (!%p1293_p12)
}
 0x3a5   : > { %s1297_s24 = scalar_lea.hbm %s1761_s28, 128  ;;  %s1301_s20 = scalar_lea.hbm %s1861_s12, 256 }
 0x3a6   : > { %p1298_p4 = scmp.ne.s32.totalorder %s1761_s28, %s1297_s24  ;;  %p1302_p13 = scmp.lt.u32.totalorder %s1761_s28, %s1861_s12 }
 0x3a7   : > { %p1303_p6 = scmp.lt.u32.totalorder %s1301_s20, %s1297_s24  ;;  %p1305_p9 = scmp.lt.u32.totalorder %s1297_s24, %s1761_s28 }
 0x3a8   : > { %p1299_p5 = pnand %p1298_p4, %p1859_p0 }
 0x3a9   : > { %p1304_p7 = por %p1303_p6, %p1302_p13 }
 0x3aa   : > { %p1300_p8 = pneg %p1299_p5 }
 0x3ab   : > { %p1306_p1 = por %p1305_p9, %p1304_p7 }
 0x3ad   : > { %p1307_p3 = pnand %p1306_p1, %p1300_p8 }
 0x3af   : > { %1310 = shalt.err (!%p1307_p3)
}
 0x3b0   : > { %1059 = dma.vmem_to_hbm [thread:$0]  (%p1859_p0), %s800_s22, 128, %s1761_s28, %s773_s30  }
 0x3b1 PF: > { %s1862_s8 = sld [smem:[#allocation20_spill]]  ;;  %s1863_s19 = sld [smem:[#allocation27_spill]] }
 0x3b2   : > { %p1078_p11 = scmp.ge.s32.totalorder %s1411_s27, 2 }
 0x3b7   : > { %s811_s16 = sand.u32 1, %s1862_s8   ;;  %p1864_p2 = scmp.ne.s32.totalorder %s1863_s19, 0 }
 0x3b8   : > { %s812_s26 = scalar_lea.sflag [#allocation8], %s811_s16 }
 0x3b9   : > { %p1071_p10 = pnand %p1078_p11, %p1864_p2 }
 0x3bb   : > { %1362 = dma.done.wait (!%p1071_p10), %s812_s26, 128  }
 0x3bc   : > { %1364 = vsyncadd (!%p1071_p10), %s812_s26, 4294967168  ;;  %s821_s23 = scalar_lea.sflag [#allocation11], %s811_s16 }
 0x3bd   : > { %1366 = dma.done.wait (!%p1071_p10), %s821_s23, 128  }
 0x3be   : > { %1368 = vsyncadd (!%p1071_p10), %s821_s23, 4294967168  ;;  %s39_s27 = sadd.s32 1, %s1411_s27   ;;  %s1865_s13 = sld [smem:[#allocation21_spill]] }
 0x3bf   : > { %p36_p12 = scmp.ge.s32.totalorder %s39_s27, 6   ;;  %s1866_s19 = sld [smem:[#allocation26_spill]] }
 0x3c0   : > { %s1867_s28 = sld [smem:[#allocation22_spill]]  ;;  %s1868_s22 = sld [smem:[#allocation28_spill]] }
 0x3c1   : > { %s1869_s24 = sld [smem:[#allocation23_spill]]  ;;  %s1870_s30 = sld [smem:[#allocation24_spill]] }
 0x3c2   : > { %s1871_s26 = sld [smem:[#allocation25_spill]]  ;;  %s1872_s1 = smov %s1375_s18 }
 0x3c3   : > { %s1874_s20 = smov %s1387_s21  ;;  %s1876_s23 = smov %s1403_s25 }
 0x3c4   : > { %s1873_s18 = smov %s1865_s13  ;;  %38 = sbr.rel (!%p36_p12) target bundleno = 37 (0x25), region = 121 }
 0x3c6   : > { %s1875_s21 = smov %s1867_s28 }
 0x3c7   : > { %s1877_s25 = smov %s1870_s30 }
 0x3cb   :  { %826 = vsyncpa [#allocation7], 1 }
 0x3cc   :  { %828 = vsyncpa [#allocation7 + $0x1], 1 }
 0x3cd   :  { %829 = vsyncpa [#allocation8], 1 }
 0x3ce   :  { %831 = vsyncpa [#allocation8 + $0x1], 1 }
 0x3cf   :  { %832 = vsyncpa [#allocation11], 1 }
 0x3d0   :  { %834 = vsyncpa [#allocation11 + $0x1], 1 }

</bundles_post_ra>
